<compile_context>
chip_gen: v7x
topology: tpu7x:2x2x1
jax: 0.10.0
libtpu: 0.0.40
codegen_flags: <defaults>
</compile_context>

<pallas_src>
import jax
import jax.numpy as jnp
from jax.experimental import pallas as pl
from jax.experimental.pallas import tpu as pltpu


def _round_up(n, m):
    return ((n + m - 1) // m) * m


def _largest_divisor_leq(n, cap):
    cap = max(1, min(n, cap))
    for d in range(cap, 0, -1):
        if n % d == 0:
            return d
    return 1


def _vmem_capacity_bytes():
    """Physical VMEM bytes of the current TPU, or None if unknown."""
    try:
        info = pltpu.get_tpu_info()
        cap = getattr(info, "vmem_capacity_bytes", None)
        if cap:
            return int(cap)
    except Exception:
        pass
    return None


def _make_fused_kernel(num_filters, N, D_in, D_out_p, bblk, activation):
    """grid = (B // bblk,): all filters + bblk batches handled in one step."""
    flat_stage1 = (N % 8 == 0)   # sublane-aligned merge of (bblk, N) -> bblk*N

    def kernel(x_ref, filt_ref, w_ref, b_ref, o_ref):
        w = w_ref[...]                                   # (D_in, F*D_out_p), resident
        if flat_stage1:
            # ONE matmul for the whole x @ W stage: M = bblk*N, width = F*D_out_p.
            x2 = x_ref[...].reshape(bblk * N, D_in)
            t_all = jnp.dot(x2, w, preferred_element_type=jnp.float32)
        else:
            t_all = jnp.einsum("bnd,dk->bnk", x_ref[...], w,
                               preferred_element_type=jnp.float32)

        filt = filt_ref[...]                             # (bblk, F*N, N)
        acc = None
        for f in range(num_filters):                     # static unroll, F small
            if flat_stage1:
                t_f = t_all[:, f * D_out_p:(f + 1) * D_out_p].reshape(bblk, N, D_out_p)
            else:
                t_f = t_all[:, :, f * D_out_p:(f + 1) * D_out_p]
            a_f = filt[:, f * N:(f + 1) * N, :]          # (bblk, N, N), aligned if N%8==0
            contrib = jnp.einsum("bij,bjd->bid", a_f, t_f.astype(a_f.dtype),
                                 preferred_element_type=jnp.float32)
            acc = contrib if acc is None else acc + contrib

        out = acc + b_ref[...]                           # bias broadcast (1, D_out_p)
        if activation is not None:
            out = activation(out)                        # elementwise, on the VPU/EUP
        o_ref[...] = out.astype(o_ref.dtype)             # single store, input dtype

    return kernel


def _make_tiled_kernel(D_out_p, activation):
    """grid = (B, F): accumulate in VMEM f32 scratch, store once at last filter."""

    def kernel(x_ref, filt_ref, w_ref, b_ref, o_ref, acc_ref):
        f = pl.program_id(1)

        col = pl.multiple_of(f * D_out_p, 128)
        w_f = w_ref[:, pl.ds(col, D_out_p)]              # (D_in, D_out_p), lane-aligned
        t = jnp.dot(x_ref[0], w_f, preferred_element_type=jnp.float32)     # (N, D_out_p)
        contrib = jnp.dot(filt_ref[0], t.astype(filt_ref.dtype),
                          preferred_element_type=jnp.float32)              # (N, D_out_p)

        @pl.when(f == 0)
        def _():
            acc_ref[...] = contrib

        @pl.when(f != 0)
        def _():
            acc_ref[...] = acc_ref[...] + contrib

        @pl.when(f == pl.num_programs(1) - 1)
        def _():
            out = acc_ref[...] + b_ref[...]
            if activation is not None:
                out = activation(out)
            o_ref[0] = out.astype(o_ref.dtype)           # single store, input dtype

    return kernel


def multi_graph_cnn_forward(x, graph_conv_filters, weight, bias, num_filters,
                            activation=None, batch_block=None,
                            force_grid_over_filters=False):
    """x: (B, N, D_in); graph_conv_filters: (B, num_filters*N, N);
       weight: (num_filters*D_in, D_out); bias: (D_out,) or None.
       `activation` must be an elementwise JAX callable (applied in-kernel)."""
    B, N, D_in = x.shape
    FD, D_out = weight.shape
    assert FD == num_filters * D_in
    assert graph_conv_filters.shape == (B, num_filters * N, N)

    # --- restacked, lane-dense weight: W_r[:, f*D_out_p:(f+1)*D_out_p] = pad(W_f) ---
    D_out_p = max(_round_up(D_out, 128), 128)
    w3 = weight.reshape(num_filters, D_in, D_out)
    if D_out_p != D_out:
        w3 = jnp.pad(w3, ((0, 0), (0, 0), (0, D_out_p - D_out)))
    w_r = jnp.transpose(w3, (1, 0, 2)).reshape(D_in, num_filters * D_out_p)

    b1 = bias if bias is not None else jnp.zeros((D_out,), weight.dtype)
    if D_out_p != D_out:
        b1 = jnp.pad(b1, (0, D_out_p - D_out))
    b_p = b1.reshape(1, D_out_p).astype(jnp.float32)

    out_dtype = x.dtype

    # --- generation-aware VMEM budgeting (v5e/v6e 128 MiB, v7x 64 MiB) ---
    cap = _vmem_capacity_bytes()
    cap_eff = cap if cap is not None else (64 << 20)
    vmem_limit = min(cap_eff - (4 << 20), max(32 << 20, (cap_eff * 3) // 4))
    block_budget = (vmem_limit * 4) // 5

    isz = x.dtype.itemsize
    fsz = graph_conv_filters.dtype.itemsize
    wsz = w_r.dtype.itemsize
    osz = jnp.dtype(out_dtype).itemsize
    w_bytes = D_in * num_filters * D_out_p * wsz + D_out_p * 4

    def fused_step_bytes(bblk):
        xb = bblk * N * D_in * isz
        fb = bblk * num_filters * N * N * fsz
        ob = bblk * N * D_out_p * osz
        tb = bblk * N * num_filters * D_out_p * 4        # stage-1 intermediate (f32)
        ab = bblk * N * D_out_p * 4                      # accumulator (f32)
        return 2 * (xb + fb + ob + w_bytes) + tb + ab    # x2: default double buffering

    can_tile = (N % 8 == 0) and num_filters > 1          # (1, N, N) block needs N % 8 == 0

    if force_grid_over_filters and can_tile:
        use_fused = False
        bblk = 1
    elif batch_block is not None:
        assert B % batch_block == 0
        bblk = batch_block
        use_fused = True
    else:
        # Keep >= 2 parallel grid steps when B >= 2 (both v7x TensorCores busy),
        # then fold as many batches per step as fit the VMEM budget.
        target_steps = 2 if B >= 2 else 1
        bblk = _largest_divisor_leq(B, pl.cdiv(B, target_steps))
        while bblk > 1 and fused_step_bytes(bblk) > block_budget:
            bblk = _largest_divisor_leq(B, bblk - 1)
        use_fused = (fused_step_bytes(bblk) <= block_budget) or not can_tile

    if use_fused:
        grid = (B // bblk,)
        kernel = _make_fused_kernel(num_filters, N, D_in, D_out_p, bblk, activation)
        in_specs = [
            pl.BlockSpec((bblk, N, D_in), lambda b: (b, 0, 0)),
            pl.BlockSpec((bblk, num_filters * N, N), lambda b: (b, 0, 0)),
            pl.BlockSpec((D_in, num_filters * D_out_p), lambda b: (0, 0)),   # resident
            pl.BlockSpec((1, D_out_p), lambda b: (0, 0)),                    # resident
        ]
        out_spec = pl.BlockSpec((bblk, N, D_out_p), lambda b: (b, 0, 0))
        scratch = []
        dims = ("parallel",)
    else:
        grid = (B, num_filters)                           # reduction axis last
        kernel = _make_tiled_kernel(D_out_p, activation)
        in_specs = [
            pl.BlockSpec((1, N, D_in), lambda b, f: (b, 0, 0)),
            pl.BlockSpec((1, N, N), lambda b, f: (b, f, 0)),
            pl.BlockSpec((D_in, num_filters * D_out_p), lambda b, f: (0, 0)),
            pl.BlockSpec((1, D_out_p), lambda b, f: (0, 0)),
        ]
        out_spec = pl.BlockSpec((1, N, D_out_p), lambda b, f: (b, 0, 0))
        scratch = [pltpu.VMEM((N, D_out_p), jnp.float32)]
        dims = ("parallel", "arbitrary")

    out_p = pl.pallas_call(
        kernel,
        out_shape=jax.ShapeDtypeStruct((B, N, D_out_p), out_dtype),
        grid_spec=pltpu.PrefetchScalarGridSpec(
            num_scalar_prefetch=0,
            grid=grid,
            in_specs=in_specs,
            out_specs=out_spec,
            scratch_shapes=scratch,
        ),
        compiler_params=pltpu.CompilerParams(
            dimension_semantics=dims,
            vmem_limit_bytes=int(vmem_limit) if cap is not None else None,
        ),
    )(x, graph_conv_filters, w_r, b_p)

    return out_p[..., :D_out] if D_out_p != D_out else out_p


def reference_forward(x, graph_conv_filters, weight, bias, num_filters):
    # pure-JAX mirror of the PyTorch 3-D branch
    conv_op = jnp.einsum("bkn,bnd->bkd", graph_conv_filters, x)           # (B, F*N, D_in)
    B, FN, _ = conv_op.shape
    N = FN // num_filters
    pieces = [conv_op[:, f * N:(f + 1) * N, :] for f in range(num_filters)]
    conv_op = jnp.concatenate(pieces, axis=2)                             # (B, N, F*D_in)
    out = jnp.einsum("bnk,ko->bno", conv_op, weight)
    if bias is not None:
        out = out + bias.reshape(1, -1)
    return out


if __name__ == "__main__":
    key = jax.random.PRNGKey(0)
    B, N, D_in, D_out, num_filters = 2, 16, 8, 32, 2

    k1, k2, k3, k4 = jax.random.split(key, 4)
    x = jax.random.normal(k1, (B, N, D_in), dtype=jnp.float32)
    graph_conv_filters = jax.random.normal(k2, (B, num_filters * N, N), dtype=jnp.float32)

    # glorot_normal (xavier_normal_) style init, deterministic
    fan_in, fan_out = num_filters * D_in, D_out
    std = (2.0 / (fan_in + fan_out)) ** 0.5
    weight = std * jax.random.normal(k3, (num_filters * D_in, D_out), dtype=jnp.float32)
    bias = 0.1 * jax.random.normal(k4, (D_out,), dtype=jnp.float32)

    ref = reference_forward(x, graph_conv_filters, weight, bias, num_filters)

    # 1) fused path, default batch blocking (>= 2 parallel steps for megacore)
    out = multi_graph_cnn_forward(x, graph_conv_filters, weight, bias, num_filters)
    out = jax.block_until_ready(out)
    assert out.shape == (B, N, D_out)
    assert out.dtype == x.dtype
    assert jnp.allclose(out, ref, atol=1e-4, rtol=1e-4), "mismatch (fused path)"

    # 2) fused path with full batch folding (one grid step, M = B*N matmul)
    out_fold = multi_graph_cnn_forward(x, graph_conv_filters, weight, bias, num_filters,
                                       batch_block=B)
    out_fold = jax.block_until_ready(out_fold)
    assert jnp.allclose(out_fold, ref, atol=1e-4, rtol=1e-4), "mismatch (batch-folded path)"

    # 3) large-graph fallback (grid over batch x filters, scratch accumulation)
    out_tiled = multi_graph_cnn_forward(x, graph_conv_filters, weight, bias, num_filters,
                                        force_grid_over_filters=True)
    out_tiled = jax.block_until_ready(out_tiled)
    assert jnp.allclose(out_tiled, ref, atol=1e-4, rtol=1e-4), "mismatch (tiled path)"

    # 4) in-kernel activation (elementwise), fused path
    out_act = multi_graph_cnn_forward(x, graph_conv_filters, weight, bias, num_filters,
                                      activation=jax.nn.relu)
    out_act = jax.block_until_ready(out_act)
    assert jnp.allclose(out_act, jnp.maximum(ref, 0.0), atol=1e-4, rtol=1e-4), \
        "mismatch (activation path)"

    print("KERNEL_OK")
</pallas_src>

<mosaic_0001>
module attributes {stable_mosaic.version = 11 : i64} {
  func.func @kernel(%arg0: i32, %arg1: memref<1x16x8xf32, #tpu.memory_space<vmem>>, %arg2: memref<1x32x16xf32, #tpu.memory_space<vmem>>, %arg3: memref<8x256xf32, #tpu.memory_space<vmem>>, %arg4: memref<1x128xf32, #tpu.memory_space<vmem>>, %arg5: memref<1x16x128xf32, #tpu.memory_space<vmem>>) attributes {dimension_semantics = [#tpu.dimension_semantics<parallel>], iteration_bounds = array<i64: 2>, scalar_prefetch = 0 : i64, scratch_operands = 0 : i64, tpu.core_type = #tpu.core_type<tc>, window_params = [{transform_indices = @transform_0, window_bounds = array<i64: 1, 16, 8>}, {transform_indices = @transform_1, window_bounds = array<i64: 1, 32, 16>}, {pipeline_mode = #tpu.pipeline_mode<synchronous>, transform_indices = @transform_2, window_bounds = array<i64: 8, 256>}, {pipeline_mode = #tpu.pipeline_mode<synchronous>, transform_indices = @transform_3, window_bounds = array<i64: 1, 128>}, {transform_indices = @transform_4, window_bounds = array<i64: 1, 16, 128>}]} {
    %c0 = arith.constant 0 : index
    %c0_0 = arith.constant 0 : index
    %0 = vector.load %arg3[%c0, %c0_0] : memref<8x256xf32, #tpu.memory_space<vmem>>, vector<8x256xf32>
    %c0_1 = arith.constant 0 : index
    %c0_2 = arith.constant 0 : index
    %c0_3 = arith.constant 0 : index
    %1 = vector.load %arg1[%c0_1, %c0_2, %c0_3] : memref<1x16x8xf32, #tpu.memory_space<vmem>>, vector<1x16x8xf32>
    %2 = vector.shape_cast %1 : vector<1x16x8xf32> to vector<16x8xf32>
    %cst = arith.constant dense<0.000000e+00> : vector<16x256xf32>
    %3 = tpu.matmul %2, %0, %cst {dimension_numbers = #tpu.dot_dimension_numbers<[1], [0], [0], [1], [0, 0, 1, 1], [], []>} : vector<16x8xf32>, vector<8x256xf32>, vector<16x256xf32> -> vector<16x256xf32>
    %c0_4 = arith.constant 0 : index
    %c0_5 = arith.constant 0 : index
    %c0_6 = arith.constant 0 : index
    %4 = vector.load %arg2[%c0_4, %c0_5, %c0_6] : memref<1x32x16xf32, #tpu.memory_space<vmem>>, vector<1x32x16xf32>
    %5 = vector.extract_strided_slice %3 {offsets = [0, 0], sizes = [16, 128], strides = [1, 1]} : vector<16x256xf32> to vector<16x128xf32>
    %6 = vector.shape_cast %5 : vector<16x128xf32> to vector<1x16x128xf32>
    %7 = vector.extract_strided_slice %4 {offsets = [0, 0, 0], sizes = [1, 16, 16], strides = [1, 1, 1]} : vector<1x32x16xf32> to vector<1x16x16xf32>
    "tpu.trace_start"() <{level = 10 : i32, message = "bij,bjd->bid"}> : () -> ()
    %cst_7 = arith.constant dense<0.000000e+00> : vector<1x16x128xf32>
    %8 = tpu.matmul %7, %6, %cst_7 {dimension_numbers = #tpu.dot_dimension_numbers<[2], [1], [1], [2], [0, 0, 0, 1, 1, 2], [0], [0]>} : vector<1x16x16xf32>, vector<1x16x128xf32>, vector<1x16x128xf32> -> vector<1x16x128xf32>
    "tpu.trace_stop"() : () -> ()
    %9 = vector.extract_strided_slice %3 {offsets = [0, 128], sizes = [16, 128], strides = [1, 1]} : vector<16x256xf32> to vector<16x128xf32>
    %10 = vector.shape_cast %9 : vector<16x128xf32> to vector<1x16x128xf32>
    %11 = vector.extract_strided_slice %4 {offsets = [0, 16, 0], sizes = [1, 16, 16], strides = [1, 1, 1]} : vector<1x32x16xf32> to vector<1x16x16xf32>
    "tpu.trace_start"() <{level = 10 : i32, message = "bij,bjd->bid"}> : () -> ()
    %cst_8 = arith.constant dense<0.000000e+00> : vector<1x16x128xf32>
    %12 = tpu.matmul %11, %10, %cst_8 {dimension_numbers = #tpu.dot_dimension_numbers<[2], [1], [1], [2], [0, 0, 0, 1, 1, 2], [0], [0]>} : vector<1x16x16xf32>, vector<1x16x128xf32>, vector<1x16x128xf32> -> vector<1x16x128xf32>
    "tpu.trace_stop"() : () -> ()
    %13 = arith.addf %8, %12 : vector<1x16x128xf32>
    %c0_9 = arith.constant 0 : index
    %c0_10 = arith.constant 0 : index
    %14 = vector.load %arg4[%c0_9, %c0_10] : memref<1x128xf32, #tpu.memory_space<vmem>>, vector<1x128xf32>
    %15 = vector.shape_cast %14 : vector<1x128xf32> to vector<1x1x128xf32>
    %16 = vector.broadcast %15 : vector<1x1x128xf32> to vector<1x16x128xf32>
    %17 = arith.addf %13, %16 : vector<1x16x128xf32>
    %c0_11 = arith.constant 0 : index
    %c0_12 = arith.constant 0 : index
    %c0_13 = arith.constant 0 : index
    %18 = vector.load %arg5[%c0_11, %c0_12, %c0_13] : memref<1x16x128xf32, #tpu.memory_space<vmem>>, vector<1x16x128xf32>
    tpu.vector_store %arg5[%c0_11, %c0_12, %c0_13], %17 {strides = array<i32>} : memref<1x16x128xf32, #tpu.memory_space<vmem>>, vector<1x16x128xf32>,
    return
  }
  func.func @transform_0(%arg0: i32) -> (i32, i32, i32) {
    %c0_i32 = arith.constant 0 : i32
    %c0_i32_0 = arith.constant 0 : i32
    %c0_i32_1 = arith.constant 0 : i32
    return %arg0, %c0_i32, %c0_i32_0 : i32, i32, i32
  }
  func.func @transform_1(%arg0: i32) -> (i32, i32, i32) {
    %c0_i32 = arith.constant 0 : i32
    %c0_i32_0 = arith.constant 0 : i32
    %c0_i32_1 = arith.constant 0 : i32
    return %arg0, %c0_i32, %c0_i32_0 : i32, i32, i32
  }
  func.func @transform_2(%arg0: i32) -> (i32, i32) {
    %c0_i32 = arith.constant 0 : i32
    %c0_i32_0 = arith.constant 0 : i32
    %c0_i32_1 = arith.constant 0 : i32
    return %c0_i32, %c0_i32_0 : i32, i32
  }
  func.func @transform_3(%arg0: i32) -> (i32, i32) {
    %c0_i32 = arith.constant 0 : i32
    %c0_i32_0 = arith.constant 0 : i32
    %c0_i32_1 = arith.constant 0 : i32
    return %c0_i32, %c0_i32_0 : i32, i32
  }
  func.func @transform_4(%arg0: i32) -> (i32, i32, i32) {
    %c0_i32 = arith.constant 0 : i32
    %c0_i32_0 = arith.constant 0 : i32
    %c0_i32_1 = arith.constant 0 : i32
    return %arg0, %c0_i32, %c0_i32_0 : i32, i32, i32
  }
}

</mosaic_0001>

<bundles_post_ra>
// kernel: tpu_custom_call.1
= control target key start
LH: loop header
LB: loop body
LE: loop exit
PB: predicated region body
PF: predicated region fallthrough
CT: control target
= control target key end

     0   :  { %9 = vsyncpa [#allocation3], 0  ;;  %s880_s0 = inlined_call_operand.vmem [shape: f32[2,16,8], index: 0, kind: input, shape index: {}]   ;;  %s881_s1 = inlined_call_operand.vmem [shape: f32[2,32,16], index: 1, kind: input, shape index: {}]   ;;  %s882_s2 = inlined_call_operand.vmem [shape: f32[8,256], index: 2, kind: input, shape index: {}]   ;;  %s883_s3 = inlined_call_operand.vmem [shape: f32[1,128], index: 3, kind: input, shape index: {}]   ;;  %s884_s4 = inlined_call_operand.hbm [shape: f32[2,16,128], index: 4, kind: output, shape index: {}]  }
   0x1   :  { %11 = vsyncpa [#allocation3 + $0x1], 0  ;;  %s761_s15 = smov 0   ;;  %s763_s16 = smov 0  }
   0x2   :  { %s765_s17 = smov 0   ;;  %s767_s18 = smov 0  }
   0x3 LB: > { %s782_s19 = sadd.s32 4294967295, %s730_s18   ;;  %s570_s20 = sadd.s32 4294967294, %s730_s18   ;;  %s730_s18 = sphi %s767_s18, %s890_s18   ;;  %s726_s17 = sphi %s765_s17, %s889_s17   ;;  %s722_s16 = sphi %s763_s16, %s888_s16   ;;  %s718_s15 = sphi %s761_s15, %s887_s15  }
   0x4   : > { %s786_s21 = sadd.s32 1, %s730_s18   ;;  %s118_s22 = sadd.s32 1, %s726_s17 }
   0x5   : > { %s115_s23 = ssub.s32 %s730_s18, %s786_s21  ;;  %p128_p0 = scmp.ne.s32.totalorder %s726_s17, %s722_s16 }
   0x6   : > { %p116_p1 = scmp.eq.s32.totalorder %s115_s23, 0  ;;  %p129_p2 = scmp.eq.s32.totalorder %s782_s19, 1 }
   0x7   : > { %p134_p3 = scmp.ne.s32.totalorder %s722_s16, %s718_s15  ;;  %p135_p4 = scmp.eq.s32.totalorder %s570_s20, 1 }
   0x8   : > { %s797_s24 = scalar_select %p116_p1, %s726_s17, %s118_s22  }
   0x9   : > { %p799_p5 = por %p129_p2, %p128_p0  ;;  %p803_p6 = por %p135_p4, %p134_p3 }
   0xa   : > { %p573_p7 = scmp.ge.s32.totalorder %s730_s18, 1  ;;  %p175_p8 = scmp.lt.s32.totalorder %s730_s18, 3 }
   0xc   : > { %p176_p9 = pnand %p573_p7, %p175_p8 }
   0xd   : > { %v217_v0 = vld [vmem:[%s882_s2 + $0x8] sm:$0xff] (!%p176_p9)  ;;  %v216_v1 = vld [vmem:[%s882_s2] sm:$0xff] (!%p176_p9)  ;;  %p206_p10 = scmp.lt.s32.totalorder (!%p176_p9), %s782_s19, 1  ;;  %v732_v2 = vmov (!%p176_p9), 0.0   ;;  %vm220_vm0 = vcmask (!%p176_p9), 64512   ;;  %vm308_vm1 = vcmask (!%p176_p9), 130048  }
   0xe   : > { %179 = sbr.rel (%p176_p9) target bundleno = 487 (0x1e7), region = 36  ;;  %227 = vmatprep.subr.mxu0 (!%p176_p9), %v217_v0  ;;  %291 = vmatprep.mubr.f32.mxu0 (!%p176_p9), %v732_v2  ;;  %s203_s14 = sand.u32 (!%p176_p9), 1, %s722_s16   ;;  %v585_v15 = vld [vmem:[%s883_s3] ss:$0 sm:$0xff] (!%p176_p9) }
   0xf   : > { %228 = vmatpush1.msra.mxu0 (!%p176_p9), %v216_v1  ;;  %s574_s20 = sshll.u32 (!%p176_p9), %s203_s14, 4  ;;  %s593_s29 = sshll.u32 (!%p176_p9), %s782_s19, 8 }
  0x10   : > { %s205_s27 = scalar_lea.vmem (!%p176_p9), [#allocation2], %s574_s20  ;;  %s839_s7 = scalar_lea.sflag (!%p176_p9), [#allocation3], %s203_s14 }
  0x11   : > { %s496_s28 = sshll.u32 (!%p176_p9), %s205_s27, 4  ;;  %s832_s28 = int_to_ptr.vmem [resolvable:$true] %s496_s28 }
  0x12   : > { %s668_s8 = scalar_lea.vmem (!%p176_p9), %s832_s28, 256 }
  0x13   : > { %p669_p11 = scmp.ne.s32.totalorder (!%p176_p9), %s832_s28, %s668_s8 }
  0x15   : > { %s207_s5 = scalar_select %p206_p10, %s782_s19, 1 }
  0x16   : > { %p670_p12 = pnand %p669_p11, %p799_p5  ;;  %s733_s19 = smov [#allocation2]  }
  0x17   : > { %s591_s6 = sshll.u32 %s207_s5, 4  ;;  %s592_s10 = sshll.u32 %s207_s5, 5 }
  0x18   : > { %s210_s9 = scalar_lea.vmem %s880_s0, %s591_s6  ;;  %s215_s13 = scalar_lea.vmem %s881_s1, %s592_s10 }
  0x19   : > { %v218_v3 = vld [vmem:[%s210_s9] sm:$0xff]  ;;  %v219_v4 = vld [vmem:[%s210_s9 + $0x8] sm:$0xff]  ;;  %v306_v5 = vld [vmem:[%s215_s13 + $0x10] sm:$0xff]  ;;  %s837_s6 = scalar_lea.hbm %s884_s4, %s593_s29  ;;  %p671_p13 = pneg %p670_p12 }
  0x1a   : > { %579 = vmatmul.mubr.msk.f32.vlgmr.msra.gmra.mrb[0].mxu0 %vm220_vm0, %v218_v3  ;;  %606 = vmatprep.mubr.msk.f32.mxu1 %vm308_vm1, %v306_v5  ;;  %v307_v12 = vld [vmem:[%s215_s13 + $0x18] sm:$0xff]  ;;  %v304_v13 = vld [vmem:[%s215_s13] sm:$0xff]  ;;  %v305_v14 = vld [vmem:[%s215_s13 + $0x8] sm:$0xff]  ;;  %s672_s9 = sshll.u32 %s733_s19, 4  ;;  %s673_s9 = int_to_ptr.vmem [resolvable:$false] %s672_s9 }
  0x1b   : > { %297 = vmatprep.mubr.f32.mxu0 %v732_v2  ;;  %s674_s10 = scalar_lea.vmem %s673_s9, 512  ;;  %p675_p0 = scmp.lt.s32.totalorder %s832_s28, %s673_s9 }
  0x1c   : > { %p676_p1 = scmp.lt.s32.totalorder %s674_s10, %s668_s8 }
  0x1e   : > { %580 = vmatmul.mubr.msk.f32.gmra.mrb[2].mxu0 %vm220_vm0, %v219_v4  ;;  %p677_p2 = por %p676_p1, %p675_p0 }
  0x20   : > { %p678_p3 = pnand %p677_p2, %p671_p13 }
  0xed   : > { %v293_v6 = vpop.f32.mrb[0].mxu0 }
  0xee   : > { %v295_v7 = vpop.f32.mrb[1].mxu0 }
  0xf1   : > { %v299_v8 = vpop.f32.mrb[2].mxu0 }
  0xf2   : > { %v620_v9 = vpack.c.bf16 %v299_v8, %v293_v6  ;;  %v301_v10 = vpop.f32.mrb[3].mxu0 }
  0xf3   : > { %v616_v11 = vpack.c.bf16 %v301_v10, %v295_v7 }
  0xf5   : > { %617 = vmatprep.subr.bf16.mxu1 %v616_v11 }
  0xf6   : > { %619 = vmatpush3.bf16.msra.mxu1 %v616_v11 }
  0xf7   : > { %621 = vmatprep.subr.bf16.mxu1 %v620_v9 }
  0xf9   : > { %607 = vmatmul.mubr.msk.f32.vlgmr.msra.gmra.mrb[0].mxu1 %vm308_vm1, %v307_v12 }
  0xfa   : > { %623 = vmatpush3.bf16.msra.mxu1 %v620_v9  ;;  %613 = vmatprep.mubr.msk.f32.mxu1 %vm308_vm1, %v304_v13 }
 0x101   : > { %614 = vmatmul.mubr.msk.f32.vlgmr.msra.gmra.mrb[0].mxu1 %vm308_vm1, %v305_v14 }
 0x1d4   : > { %v615_v16 = vpop.f32.mrb[0].mxu1 }
 0x1d5   : > { %v479_v17 = vadd.f32 %v615_v16, %v585_v15  ;;  %v462_v18 = vpop.f32.mrb[1].mxu1 }
 0x1d6   : > { %v478_v19 = vadd.f32 %v585_v15, %v462_v18 }
 0x1d7   : > { %481 = vst [vmem:[%s205_s27 + $0x8] sm:$0xff] %v479_v17 }
 0x1d8   : > { %480 = vst [vmem:[%s205_s27] sm:$0xff] %v478_v19 }
 0x1d9   : > { %681 = shalt.err (!%p678_p3)
}
 0x1da   : > { %s682_s11 = scalar_lea.hbm %s837_s6, 256  ;;  %s686_s14 = scalar_lea.hbm %s884_s4, 512 }
 0x1db   : > { %p683_p4 = scmp.ne.s32.totalorder %s837_s6, %s682_s11  ;;  %p687_p9 = scmp.lt.u32.totalorder %s837_s6, %s884_s4 }
 0x1dc   : > { %p688_p10 = scmp.lt.u32.totalorder %s686_s14, %s682_s11  ;;  %p690_p12 = scmp.lt.u32.totalorder %s682_s11, %s837_s6 }
 0x1dd   : > { %p684_p7 = pnand %p683_p4, %p799_p5 }
 0x1de   : > { %p689_p11 = por %p688_p10, %p687_p9 }
 0x1df   : > { %p685_p8 = pneg %p684_p7 }
 0x1e0   : > { %p691_p13 = por %p690_p12, %p689_p11 }
 0x1e2   : > { %p692_p0 = pnand %p691_p13, %p685_p8 }
 0x1e4   : > { %695 = shalt.err (!%p692_p0)
}
 0x1e5   : > { %s734_s23 = smov 128   ;;  %s735_s27 = smov 8  }
 0x1e6   : > { %626 = dma.vmem_to_hbm [thread:$0]  (%p799_p5), %s832_s28, 256, %s837_s6, %s839_s7, %s734_s23, %s734_s23, %s735_s27  }
 0x1e7 PF: > { %p632_p1 = scmp.ge.s32.totalorder %s730_s18, 2  ;;  %s511_s29 = sand.u32 1, %s718_s15  }
 0x1e8   : > { %s512_s30 = scalar_lea.sflag [#allocation3], %s511_s29 }
 0x1e9   : > { %p629_p2 = pnand %p632_p1, %p803_p6 }
 0x1eb   : > { %713 = dma.done.wait (!%p629_p2), %s512_s30, 256  }
 0x1ec   : > { %715 = vsyncadd (!%p629_p2), %s512_s30, 4294967040  ;;  %p14_p3 = scmp.ge.s32.totalorder %s786_s21, 4   ;;  %s887_s15 = smov %s722_s16 }
 0x1ed   : > { %s888_s16 = smov %s726_s17  ;;  %s889_s17 = smov %s797_s24 }
 0x1ee   : > { %s890_s18 = smov %s786_s21  ;;  %16 = sbr.rel (!%p14_p3) target bundleno = 3 (0x3), region = 74 }
 0x1f5   :  { %517 = vsyncpa [#allocation3], 1 }
 0x1f6   :  { %519 = vsyncpa [#allocation3 + $0x1], 1 }

</bundles_post_ra>
